<compile_context>
chip_gen: v7x
topology: tpu7x:2x2x1
jax: 0.10.0
libtpu: 0.0.40
codegen_flags: <defaults>
</compile_context>

<pallas_src>
import functools

import jax
import jax.numpy as jnp
from jax.experimental import pallas as pl
from jax.experimental.pallas import tpu as pltpu


def _sigmoid(v):
    return 1.0 / (1.0 + jnp.exp(-v))


def _round_up(n, m):
    return ((n + m - 1) // m) * m


def _choose_time_tile(t):
    """Largest 'nice' time tile that divides T (keeps VMEM bounded for long T)."""
    if t <= 1024:
        return t
    for cand in (1024, 896, 768, 640, 512, 384, 256, 128):
        if t % cand == 0:
            return cand
    return t  # no aligned divisor: fall back to a single (large) time tile


def _conformer_conv_kernel(x_ref, lh_ref, rh_ref,
                           w1a_ref, w1b_ref, b1a_ref, b1b_ref,
                           wdw_ref, shift_ref, w2_ref, b2_ref,
                           o_ref, *,
                           kernel_size, pad, t_tile, t_total, l_ext):
    K, P, tT, L = kernel_size, pad, t_tile, l_ext
    D = x_ref.shape[-1]
    j = pl.program_id(1)                      # time-tile index

    # ---- assemble the time-extended tile: [left halo | tile | right halo | pad-to-8] ----
    pieces = [lh_ref[0, 0], x_ref[0], rh_ref[0, 0]]
    if L > tT + 2 * P:
        pieces.append(jnp.zeros((L - (tT + 2 * P), D), x_ref.dtype))
    x_ext = jnp.concatenate(pieces, axis=0)                       # (L, D), input dtype

    # ---- pointwise_conv1 split into the two GLU halves (MXU), f32 accumulate ----
    ha = jnp.dot(x_ext, w1a_ref[...], preferred_element_type=jnp.float32) + b1a_ref[...]
    hb = jnp.dot(x_ext, w1b_ref[...], preferred_element_type=jnp.float32) + b1b_ref[...]
    g = ha * _sigmoid(hb)                                         # GLU, (L, D) f32

    # ---- reproduce the depthwise conv's zero padding in-kernel: zero every row whose
    #      global time index is outside [0, T) (only halo rows of the first/last tile) ----
    row = jax.lax.broadcasted_iota(jnp.int32, (L, D), 0)
    gidx = row + (j * tT - P)
    g = jnp.where((gidx >= 0) & (gidx < t_total), g, 0.0)

    # ---- depthwise conv with BN folded in (scale into the tap weights, conv-bias +
    #      BN-shift into `shift`). g is a value loaded/computed once; tap shifts are
    #      cheap static sublane shifts; acc starts from tap 0 + shift (no zeros init,
    #      no separate bias/BN pass). ----
    wdw = wdw_ref[...]                                            # (K, D) f32, hoisted
    acc = g[0:tT] * wdw[0:1, :] + shift_ref[...]
    for k in range(1, K):                                         # K is small & static
        acc = acc + g[k:k + tT] * wdw[k:k + 1, :]

    # ---- Swish / SiLU ----
    z = acc * _sigmoid(acc)

    # ---- pointwise_conv2 (MXU) ----
    out = jnp.dot(z.astype(w2_ref.dtype), w2_ref[...],
                  preferred_element_type=jnp.float32) + b2_ref[...]
    o_ref[0] = out.astype(o_ref.dtype)


def conformer_convolution(x, pw1_w, pw1_b, dw_w, dw_b,
                          bn_gamma, bn_beta, bn_mean, bn_var,
                          pw2_w, pw2_b, *,
                          kernel_size, bn_eps=1e-5, time_tile=None):
    """Fused ConformerConvolution forward.

    x     : (B, T, D) activations (bf16 or f32)
    pw1_w : (2D, D, 1), pw1_b (2D,)   pointwise_conv1 (1x1)
    dw_w  : (D, 1, K),  dw_b  (D,)    depthwise conv (groups=D), pad (K-1)//2 each side
    bn_*  : (D,)                      BatchNorm1d eval-mode params / running stats
    pw2_w : (D, D, 1),  pw2_b (D,)    pointwise_conv2 (1x1)
    Returns (B, T, D) in x.dtype.
    """
    B, T, D = x.shape
    K = int(kernel_size)
    assert K % 2 == 1 and K >= 3, "kernel_size must be odd and >= 3"
    P = (K - 1) // 2

    tT = int(time_tile) if time_tile is not None else _choose_time_tile(T)
    assert T % tT == 0, "time tile must divide T"
    nT = T // tT
    assert nT == 1 or P <= tT, "time tile must cover the depthwise halo"

    dtype = x.dtype
    f32 = jnp.float32

    # ---- tiny host-side weight preprocessing (O(D*D); negligible HBM traffic) ----
    w1a = pw1_w[:D, :, 0].T.astype(dtype)                         # (D, D) GLU "a" half
    w1b = pw1_w[D:, :, 0].T.astype(dtype)                         # (D, D) GLU gate half
    b1a = pw1_b[:D].astype(f32).reshape(1, D)
    b1b = pw1_b[D:].astype(f32).reshape(1, D)

    bn_scale = bn_gamma.astype(f32) / jnp.sqrt(bn_var.astype(f32) + bn_eps)
    bn_shift = bn_beta.astype(f32) - bn_mean.astype(f32) * bn_scale
    w_dw = dw_w[:, 0, :].T.astype(f32) * bn_scale[None, :]        # (K, D) BN scale folded
    shift = (dw_b.astype(f32) * bn_scale + bn_shift).reshape(1, D)

    w2 = pw2_w[:, :, 0].T.astype(dtype)                           # (D, D)
    b2 = pw2_b.astype(f32).reshape(1, D)

    # ---- (K-1)//2-row halos so time tiles stay independent (tiny side inputs) ----
    if nT == 1:
        lhalo = jnp.zeros((B, 1, P, D), dtype)
        rhalo = jnp.zeros((B, 1, P, D), dtype)
    else:
        xr = x.reshape(B, nT, tT, D)
        zpad = jnp.zeros((B, 1, P, D), dtype)
        lhalo = jnp.concatenate([zpad, xr[:, :-1, tT - P:, :]], axis=1)   # (B, nT, P, D)
        rhalo = jnp.concatenate([xr[:, 1:, :P, :], zpad], axis=1)         # (B, nT, P, D)

    L = _round_up(tT + 2 * P, 8)

    kernel = functools.partial(
        _conformer_conv_kernel,
        kernel_size=K, pad=P, t_tile=tT, t_total=T, l_ext=L)

    itemsize = jnp.dtype(dtype).itemsize
    est = (4 * tT * D * itemsize            # double-buffered x / out tiles
           + 8 * L * D * 4                  # f32 intermediates (x_ext, ha, hb, g, acc, ...)
           + 4 * D * D * itemsize + 64 * D)
    vmem_limit = int(min(64 * 2 ** 20, max(32 * 2 ** 20, 2 * est)))

    w_idx = lambda b, j: (0, 0)             # weights: resident, never re-fetched

    out = pl.pallas_call(
        kernel,
        out_shape=jax.ShapeDtypeStruct((B, T, D), dtype),
        grid_spec=pltpu.PrefetchScalarGridSpec(
            num_scalar_prefetch=0,
            grid=(B, nT),
            in_specs=[
                pl.BlockSpec((1, tT, D), lambda b, j: (b, j, 0)),        # x tile
                pl.BlockSpec((1, 1, P, D), lambda b, j: (b, j, 0, 0)),   # left halo
                pl.BlockSpec((1, 1, P, D), lambda b, j: (b, j, 0, 0)),   # right halo
                pl.BlockSpec((D, D), w_idx),                             # w1a
                pl.BlockSpec((D, D), w_idx),                             # w1b
                pl.BlockSpec((1, D), w_idx),                             # b1a
                pl.BlockSpec((1, D), w_idx),                             # b1b
                pl.BlockSpec((K, D), w_idx),                             # w_dw (BN folded)
                pl.BlockSpec((1, D), w_idx),                             # shift (bias+BN)
                pl.BlockSpec((D, D), w_idx),                             # w2
                pl.BlockSpec((1, D), w_idx),                             # b2
            ],
            out_specs=pl.BlockSpec((1, tT, D), lambda b, j: (b, j, 0)),
        ),
        compiler_params=pltpu.CompilerParams(
            dimension_semantics=("parallel", "parallel"),
            vmem_limit_bytes=vmem_limit),
    )(x, lhalo, rhalo, w1a, w1b, b1a, b1b, w_dw, shift, w2, b2)
    return out


def _reference(x, pw1_w, pw1_b, dw_w, dw_b,
               bn_gamma, bn_beta, bn_mean, bn_var,
               pw2_w, pw2_b, *, kernel_size, bn_eps=1e-5):
    """Pure-JAX reference matching the PyTorch module (eval-mode BN)."""
    B, T, D = x.shape
    K = kernel_size
    P = (K - 1) // 2
    hp = jax.lax.Precision.HIGHEST

    x32 = x.astype(jnp.float32)
    W1 = pw1_w[:, :, 0].astype(jnp.float32)                       # (2D, D)
    h = jnp.einsum("btd,od->bto", x32, W1, precision=hp) + pw1_b.astype(jnp.float32)
    g = h[..., :D] * _sigmoid(h[..., D:])                         # GLU

    gp = jnp.pad(g, ((0, 0), (P, P), (0, 0)))                     # depthwise "same" pad
    wdw = dw_w[:, 0, :].astype(jnp.float32)                       # (D, K)
    y = jnp.zeros((B, T, D), jnp.float32)
    for k in range(K):
        y = y + gp[:, k:k + T, :] * wdw[:, k][None, None, :]
    y = y + dw_b.astype(jnp.float32)

    scale = bn_gamma.astype(jnp.float32) / jnp.sqrt(bn_var.astype(jnp.float32) + bn_eps)
    y = (y - bn_mean.astype(jnp.float32)) * scale + bn_beta.astype(jnp.float32)
    y = y * _sigmoid(y)                                           # SiLU

    W2 = pw2_w[:, :, 0].astype(jnp.float32)                       # (D, D)
    out = jnp.einsum("btd,od->bto", y, W2, precision=hp) + pw2_b.astype(jnp.float32)
    return out.astype(x.dtype)


if __name__ == "__main__":
    B, T, D, K = 2, 16, 32, 3

    key = jax.random.PRNGKey(0)
    ks = jax.random.split(key, 11)
    x = jax.random.normal(ks[0], (B, T, D), jnp.float32)
    pw1_w = jax.random.normal(ks[1], (2 * D, D, 1), jnp.float32) * (D ** -0.5)
    pw1_b = jax.random.normal(ks[2], (2 * D,), jnp.float32) * 0.1
    dw_w = jax.random.normal(ks[3], (D, 1, K), jnp.float32) * (K ** -0.5)
    dw_b = jax.random.normal(ks[4], (D,), jnp.float32) * 0.1
    bn_gamma = 1.0 + 0.1 * jax.random.normal(ks[5], (D,), jnp.float32)
    bn_beta = 0.1 * jax.random.normal(ks[6], (D,), jnp.float32)
    bn_mean = 0.1 * jax.random.normal(ks[7], (D,), jnp.float32)
    bn_var = 0.5 + jax.nn.softplus(jax.random.normal(ks[8], (D,), jnp.float32))
    pw2_w = jax.random.normal(ks[9], (D, D, 1), jnp.float32) * (D ** -0.5)
    pw2_b = jax.random.normal(ks[10], (D,), jnp.float32) * 0.1

    y = conformer_convolution(x, pw1_w, pw1_b, dw_w, dw_b,
                              bn_gamma, bn_beta, bn_mean, bn_var,
                              pw2_w, pw2_b, kernel_size=K)
    y = jax.block_until_ready(y)

    y_ref = _reference(x, pw1_w, pw1_b, dw_w, dw_b,
                       bn_gamma, bn_beta, bn_mean, bn_var,
                       pw2_w, pw2_b, kernel_size=K)

    assert y.shape == (B, T, D), y.shape
    assert jnp.allclose(y, y_ref, atol=1e-3, rtol=1e-3), \
        float(jnp.max(jnp.abs(y.astype(jnp.float32) - y_ref.astype(jnp.float32))))

    print("KERNEL_OK")
</pallas_src>

<mosaic_0001>
module attributes {stable_mosaic.version = 11 : i64} {
  func.func @_conformer_conv_kernel(%arg0: i32, %arg1: i32, %arg2: memref<1x16x32xf32, #tpu.memory_space<vmem>>, %arg3: memref<1x1x1x32xf32, #tpu.memory_space<vmem>>, %arg4: memref<1x1x1x32xf32, #tpu.memory_space<vmem>>, %arg5: memref<32x32xf32, #tpu.memory_space<vmem>>, %arg6: memref<32x32xf32, #tpu.memory_space<vmem>>, %arg7: memref<1x32xf32, #tpu.memory_space<vmem>>, %arg8: memref<1x32xf32, #tpu.memory_space<vmem>>, %arg9: memref<3x32xf32, #tpu.memory_space<vmem>>, %arg10: memref<1x32xf32, #tpu.memory_space<vmem>>, %arg11: memref<32x32xf32, #tpu.memory_space<vmem>>, %arg12: memref<1x32xf32, #tpu.memory_space<vmem>>, %arg13: memref<1x16x32xf32, #tpu.memory_space<vmem>>) attributes {dimension_semantics = [#tpu.dimension_semantics<parallel>, #tpu.dimension_semantics<parallel>], iteration_bounds = array<i64: 2, 1>, scalar_prefetch = 0 : i64, scratch_operands = 0 : i64, tpu.core_type = #tpu.core_type<tc>, window_params = [{transform_indices = @transform_0, window_bounds = array<i64: 1, 16, 32>}, {transform_indices = @transform_1, window_bounds = array<i64: 1, 1, 1, 32>}, {transform_indices = @transform_2, window_bounds = array<i64: 1, 1, 1, 32>}, {pipeline_mode = #tpu.pipeline_mode<synchronous>, transform_indices = @transform_3, window_bounds = array<i64: 32, 32>}, {pipeline_mode = #tpu.pipeline_mode<synchronous>, transform_indices = @transform_4, window_bounds = array<i64: 32, 32>}, {pipeline_mode = #tpu.pipeline_mode<synchronous>, transform_indices = @transform_5, window_bounds = array<i64: 1, 32>}, {pipeline_mode = #tpu.pipeline_mode<synchronous>, transform_indices = @transform_6, window_bounds = array<i64: 1, 32>}, {pipeline_mode = #tpu.pipeline_mode<synchronous>, transform_indices = @transform_7, window_bounds = array<i64: 3, 32>}, {pipeline_mode = #tpu.pipeline_mode<synchronous>, transform_indices = @transform_8, window_bounds = array<i64: 1, 32>}, {pipeline_mode = #tpu.pipeline_mode<synchronous>, transform_indices = @transform_9, window_bounds = array<i64: 32, 32>}, {pipeline_mode = #tpu.pipeline_mode<synchronous>, transform_indices = @transform_10, window_bounds = array<i64: 1, 32>}, {transform_indices = @transform_11, window_bounds = array<i64: 1, 16, 32>}]} {
    %c0 = arith.constant 0 : index
    %c0_0 = arith.constant 0 : index
    %c0_1 = arith.constant 0 : index
    %c0_2 = arith.constant 0 : index
    %0 = vector.load %arg3[%c0, %c0_0, %c0_1, %c0_2] : memref<1x1x1x32xf32, #tpu.memory_space<vmem>>, vector<1x1x1x32xf32>
    %1 = vector.shape_cast %0 : vector<1x1x1x32xf32> to vector<1x32xf32>
    %c0_3 = arith.constant 0 : index
    %c0_4 = arith.constant 0 : index
    %c0_5 = arith.constant 0 : index
    %2 = vector.load %arg2[%c0_3, %c0_4, %c0_5] : memref<1x16x32xf32, #tpu.memory_space<vmem>>, vector<1x16x32xf32>
    %3 = vector.shape_cast %2 : vector<1x16x32xf32> to vector<16x32xf32>
    %c0_6 = arith.constant 0 : index
    %c0_7 = arith.constant 0 : index
    %c0_8 = arith.constant 0 : index
    %c0_9 = arith.constant 0 : index
    %4 = vector.load %arg4[%c0_6, %c0_7, %c0_8, %c0_9] : memref<1x1x1x32xf32, #tpu.memory_space<vmem>>, vector<1x1x1x32xf32>
    %5 = vector.shape_cast %4 : vector<1x1x1x32xf32> to vector<1x32xf32>
    %cst = arith.constant 0.000000e+00 : f32
    %6 = vector.broadcast %cst : f32 to vector<6x32xf32>
    %7 = tpu.concatenate %1, %3, %5, %6 in 0 : vector<1x32xf32>, vector<16x32xf32>, vector<1x32xf32>, vector<6x32xf32> -> vector<24x32xf32>
    %c0_10 = arith.constant 0 : index
    %c0_11 = arith.constant 0 : index
    %8 = vector.load %arg5[%c0_10, %c0_11] : memref<32x32xf32, #tpu.memory_space<vmem>>, vector<32x32xf32>
    %cst_12 = arith.constant dense<0.000000e+00> : vector<24x32xf32>
    %9 = tpu.matmul %7, %8, %cst_12 {dimension_numbers = #tpu.dot_dimension_numbers<[1], [0], [0], [1], [0, 0, 1, 1], [], []>} : vector<24x32xf32>, vector<32x32xf32>, vector<24x32xf32> -> vector<24x32xf32>
    %c0_13 = arith.constant 0 : index
    %c0_14 = arith.constant 0 : index
    %10 = vector.load %arg7[%c0_13, %c0_14] : memref<1x32xf32, #tpu.memory_space<vmem>>, vector<1x32xf32>
    %11 = vector.broadcast %10 : vector<1x32xf32> to vector<24x32xf32>
    %12 = arith.addf %9, %11 : vector<24x32xf32>
    %c0_15 = arith.constant 0 : index
    %c0_16 = arith.constant 0 : index
    %13 = vector.load %arg6[%c0_15, %c0_16] : memref<32x32xf32, #tpu.memory_space<vmem>>, vector<32x32xf32>
    %cst_17 = arith.constant dense<0.000000e+00> : vector<24x32xf32>
    %14 = tpu.matmul %7, %13, %cst_17 {dimension_numbers = #tpu.dot_dimension_numbers<[1], [0], [0], [1], [0, 0, 1, 1], [], []>} : vector<24x32xf32>, vector<32x32xf32>, vector<24x32xf32> -> vector<24x32xf32>
    %c0_18 = arith.constant 0 : index
    %c0_19 = arith.constant 0 : index
    %15 = vector.load %arg8[%c0_18, %c0_19] : memref<1x32xf32, #tpu.memory_space<vmem>>, vector<1x32xf32>
    %16 = vector.broadcast %15 : vector<1x32xf32> to vector<24x32xf32>
    %17 = arith.addf %14, %16 : vector<24x32xf32>
    %cst_20 = arith.constant 0.000000e+00 : f32
    %18 = vector.broadcast %cst_20 : f32 to vector<24x32xf32>
    %19 = arith.subf %18, %17 : vector<24x32xf32>
    %20 = math.exp %19 : vector<24x32xf32>
    %cst_21 = arith.constant 1.000000e+00 : f32
    %21 = vector.broadcast %cst_21 : f32 to vector<24x32xf32>
    %22 = arith.addf %21, %20 : vector<24x32xf32>
    %cst_22 = arith.constant 1.000000e+00 : f32
    %23 = vector.broadcast %cst_22 : f32 to vector<24x32xf32>
    %24 = arith.divf %23, %22 : vector<24x32xf32>
    %25 = arith.mulf %12, %24 : vector<24x32xf32>
    %26 = tpu.iota {dimensions = array<i32: 0>} : vector<24x32xi32>
    %c16_i32 = arith.constant 16 : i32
    %27 = arith.muli %arg1, %c16_i32 : i32
    %c1_i32 = arith.constant 1 : i32
    %28 = arith.subi %27, %c1_i32 : i32
    %29 = vector.broadcast %28 : i32 to vector<24x32xi32>
    %30 = arith.addi %26, %29 : vector<24x32xi32>
    %c0_i32 = arith.constant 0 : i32
    %31 = vector.broadcast %c0_i32 : i32 to vector<24x32xi32>
    %32 = arith.cmpi sge, %30, %31 : vector<24x32xi32>
    %c16_i32_23 = arith.constant 16 : i32
    %33 = vector.broadcast %c16_i32_23 : i32 to vector<24x32xi32>
    %34 = arith.cmpi slt, %30, %33 : vector<24x32xi32>
    %35 = arith.andi %32, %34 : vector<24x32xi1>
    %cst_24 = arith.constant 0.000000e+00 : f32
    %36 = vector.broadcast %cst_24 : f32 to vector<24x32xf32>
    %37 = arith.select %35, %25, %36 : vector<24x32xi1>, vector<24x32xf32>
    %c0_25 = arith.constant 0 : index
    %c0_26 = arith.constant 0 : index
    %38 = vector.load %arg9[%c0_25, %c0_26] : memref<3x32xf32, #tpu.memory_space<vmem>>, vector<3x32xf32>
    %39 = vector.extract_strided_slice %37 {offsets = [0, 0], sizes = [16, 32], strides = [1, 1]} : vector<24x32xf32> to vector<16x32xf32>
    %40 = vector.extract_strided_slice %38 {offsets = [0, 0], sizes = [1, 32], strides = [1, 1]} : vector<3x32xf32> to vector<1x32xf32>
    %41 = vector.broadcast %40 : vector<1x32xf32> to vector<16x32xf32>
    %42 = arith.mulf %39, %41 : vector<16x32xf32>
    %c0_27 = arith.constant 0 : index
    %c0_28 = arith.constant 0 : index
    %43 = vector.load %arg10[%c0_27, %c0_28] : memref<1x32xf32, #tpu.memory_space<vmem>>, vector<1x32xf32>
    %44 = vector.broadcast %43 : vector<1x32xf32> to vector<16x32xf32>
    %45 = arith.addf %42, %44 : vector<16x32xf32>
    %46 = vector.extract_strided_slice %37 {offsets = [1, 0], sizes = [16, 32], strides = [1, 1]} : vector<24x32xf32> to vector<16x32xf32>
    %47 = vector.extract_strided_slice %38 {offsets = [1, 0], sizes = [1, 32], strides = [1, 1]} : vector<3x32xf32> to vector<1x32xf32>
    %48 = vector.broadcast %47 : vector<1x32xf32> to vector<16x32xf32>
    %49 = arith.mulf %46, %48 : vector<16x32xf32>
    %50 = arith.addf %45, %49 : vector<16x32xf32>
    %51 = vector.extract_strided_slice %37 {offsets = [2, 0], sizes = [16, 32], strides = [1, 1]} : vector<24x32xf32> to vector<16x32xf32>
    %52 = vector.extract_strided_slice %38 {offsets = [2, 0], sizes = [1, 32], strides = [1, 1]} : vector<3x32xf32> to vector<1x32xf32>
    %53 = vector.broadcast %52 : vector<1x32xf32> to vector<16x32xf32>
    %54 = arith.mulf %51, %53 : vector<16x32xf32>
    %55 = arith.addf %50, %54 : vector<16x32xf32>
    %cst_29 = arith.constant 0.000000e+00 : f32
    %56 = vector.broadcast %cst_29 : f32 to vector<16x32xf32>
    %57 = arith.subf %56, %55 : vector<16x32xf32>
    %58 = math.exp %57 : vector<16x32xf32>
    %cst_30 = arith.constant 1.000000e+00 : f32
    %59 = vector.broadcast %cst_30 : f32 to vector<16x32xf32>
    %60 = arith.addf %59, %58 : vector<16x32xf32>
    %cst_31 = arith.constant 1.000000e+00 : f32
    %61 = vector.broadcast %cst_31 : f32 to vector<16x32xf32>
    %62 = arith.divf %61, %60 : vector<16x32xf32>
    %63 = arith.mulf %55, %62 : vector<16x32xf32>
    %c0_32 = arith.constant 0 : index
    %c0_33 = arith.constant 0 : index
    %64 = vector.load %arg11[%c0_32, %c0_33] : memref<32x32xf32, #tpu.memory_space<vmem>>, vector<32x32xf32>
    %cst_34 = arith.constant dense<0.000000e+00> : vector<16x32xf32>
    %65 = tpu.matmul %63, %64, %cst_34 {dimension_numbers = #tpu.dot_dimension_numbers<[1], [0], [0], [1], [0, 0, 1, 1], [], []>} : vector<16x32xf32>, vector<32x32xf32>, vector<16x32xf32> -> vector<16x32xf32>
    %c0_35 = arith.constant 0 : index
    %c0_36 = arith.constant 0 : index
    %66 = vector.load %arg12[%c0_35, %c0_36] : memref<1x32xf32, #tpu.memory_space<vmem>>, vector<1x32xf32>
    %67 = vector.broadcast %66 : vector<1x32xf32> to vector<16x32xf32>
    %68 = arith.addf %65, %67 : vector<16x32xf32>
    %c0_37 = arith.constant 0 : index
    %c0_38 = arith.constant 0 : index
    %c0_39 = arith.constant 0 : index
    %69 = vector.load %arg13[%c0_37, %c0_38, %c0_39] : memref<1x16x32xf32, #tpu.memory_space<vmem>>, vector<1x16x32xf32>
    %70 = vector.shape_cast %69 : vector<1x16x32xf32> to vector<16x32xf32>
    %71 = vector.shape_cast %68 : vector<16x32xf32> to vector<1x16x32xf32>
    tpu.vector_store %arg13[%c0_37, %c0_38, %c0_39], %71 {strides = array<i32>} : memref<1x16x32xf32, #tpu.memory_space<vmem>>, vector<1x16x32xf32>,
    return
  }
  func.func @transform_0(%arg0: i32, %arg1: i32) -> (i32, i32, i32) {
    %c0_i32 = arith.constant 0 : i32
    %c0_i32_0 = arith.constant 0 : i32
    return %arg0, %arg1, %c0_i32 : i32, i32, i32
  }
  func.func @transform_1(%arg0: i32, %arg1: i32) -> (i32, i32, i32, i32) {
    %c0_i32 = arith.constant 0 : i32
    %c0_i32_0 = arith.constant 0 : i32
    %c0_i32_1 = arith.constant 0 : i32
    return %arg0, %arg1, %c0_i32, %c0_i32_0 : i32, i32, i32, i32
  }
  func.func @transform_2(%arg0: i32, %arg1: i32) -> (i32, i32, i32, i32) {
    %c0_i32 = arith.constant 0 : i32
    %c0_i32_0 = arith.constant 0 : i32
    %c0_i32_1 = arith.constant 0 : i32
    return %arg0, %arg1, %c0_i32, %c0_i32_0 : i32, i32, i32, i32
  }
  func.func @transform_3(%arg0: i32, %arg1: i32) -> (i32, i32) {
    %c0_i32 = arith.constant 0 : i32
    %c0_i32_0 = arith.constant 0 : i32
    %c0_i32_1 = arith.constant 0 : i32
    return %c0_i32, %c0_i32_0 : i32, i32
  }
  func.func @transform_4(%arg0: i32, %arg1: i32) -> (i32, i32) {
    %c0_i32 = arith.constant 0 : i32
    %c0_i32_0 = arith.constant 0 : i32
    %c0_i32_1 = arith.constant 0 : i32
    return %c0_i32, %c0_i32_0 : i32, i32
  }
  func.func @transform_5(%arg0: i32, %arg1: i32) -> (i32, i32) {
    %c0_i32 = arith.constant 0 : i32
    %c0_i32_0 = arith.constant 0 : i32
    %c0_i32_1 = arith.constant 0 : i32
    return %c0_i32, %c0_i32_0 : i32, i32
  }
  func.func @transform_6(%arg0: i32, %arg1: i32) -> (i32, i32) {
    %c0_i32 = arith.constant 0 : i32
    %c0_i32_0 = arith.constant 0 : i32
    %c0_i32_1 = arith.constant 0 : i32
    return %c0_i32, %c0_i32_0 : i32, i32
  }
  func.func @transform_7(%arg0: i32, %arg1: i32) -> (i32, i32) {
    %c0_i32 = arith.constant 0 : i32
    %c0_i32_0 = arith.constant 0 : i32
    %c0_i32_1 = arith.constant 0 : i32
    return %c0_i32, %c0_i32_0 : i32, i32
  }
  func.func @transform_8(%arg0: i32, %arg1: i32) -> (i32, i32) {
    %c0_i32 = arith.constant 0 : i32
    %c0_i32_0 = arith.constant 0 : i32
    %c0_i32_1 = arith.constant 0 : i32
    return %c0_i32, %c0_i32_0 : i32, i32
  }
  func.func @transform_9(%arg0: i32, %arg1: i32) -> (i32, i32) {
    %c0_i32 = arith.constant 0 : i32
    %c0_i32_0 = arith.constant 0 : i32
    %c0_i32_1 = arith.constant 0 : i32
    return %c0_i32, %c0_i32_0 : i32, i32
  }
  func.func @transform_10(%arg0: i32, %arg1: i32) -> (i32, i32) {
    %c0_i32 = arith.constant 0 : i32
    %c0_i32_0 = arith.constant 0 : i32
    %c0_i32_1 = arith.constant 0 : i32
    return %c0_i32, %c0_i32_0 : i32, i32
  }
  func.func @transform_11(%arg0: i32, %arg1: i32) -> (i32, i32, i32) {
    %c0_i32 = arith.constant 0 : i32
    %c0_i32_0 = arith.constant 0 : i32
    return %arg0, %arg1, %c0_i32 : i32, i32, i32
  }
}

</mosaic_0001>

<bundles_post_ra>
// kernel: tpu_custom_call.1
= control target key start
LH: loop header
LB: loop body
LE: loop exit
PB: predicated region body
PF: predicated region fallthrough
CT: control target
= control target key end

     0   :  { %s2307_s0 = inlined_call_operand.hbm [shape: f32[2,16,32], index: 0, kind: input, shape index: {}]   ;;  %s2308_s1 = inlined_call_operand.vmem [shape: f32[2,1,1,32], index: 1, kind: input, shape index: {}]   ;;  %s2309_s2 = inlined_call_operand.hbm [shape: f32[2,1,1,32], index: 2, kind: input, shape index: {}]   ;;  %s2310_s3 = inlined_call_operand.hbm [shape: f32[32,32], index: 3, kind: input, shape index: {}]   ;;  %s2311_s4 = inlined_call_operand.hbm [shape: f32[32,32], index: 4, kind: input, shape index: {}]   ;;  %s2312_s5 = inlined_call_operand.hbm [shape: f32[1,32], index: 5, kind: input, shape index: {}]   ;;  %s2313_s6 = inlined_call_operand.hbm [shape: f32[1,32], index: 6, kind: input, shape index: {}]   ;;  %s2314_s7 = inlined_call_operand.hbm [shape: f32[3,32], index: 7, kind: input, shape index: {}]   ;;  %s2315_s8 = inlined_call_operand.hbm [shape: f32[1,32], index: 8, kind: input, shape index: {}]   ;;  %s2316_s9 = inlined_call_operand.vmem [shape: f32[32,32], index: 9, kind: input, shape index: {}]   ;;  %s2317_s10 = inlined_call_operand.vmem [shape: f32[1,32], index: 10, kind: input, shape index: {}]   ;;  %s2318_s11 = inlined_call_operand.hbm [shape: f32[2,16,32], index: 11, kind: output, shape index: {}]  }
   0x1   :  { %2328 = sst [smem:[#allocation25_spill]] %s2307_s0 }
   0x2   :  { %2329 = sst [smem:[#allocation26_spill]] %s2308_s1 }
   0x3   :  { %2330 = sst [smem:[#allocation27_spill]] %s2310_s3 }
   0x4   :  { %2331 = sst [smem:[#allocation28_spill]] %s2311_s4 }
   0x5   :  { %2332 = sst [smem:[#allocation29_spill]] %s2312_s5 }
   0x6   :  { %2333 = sst [smem:[#allocation30_spill]] %s2313_s6 }
   0x7   :  { %2334 = sst [smem:[#allocation31_spill]] %s2316_s9 }
   0x8   :  { %2335 = sst [smem:[#allocation32_spill]] %s2317_s10 }
   0x9   :  { %2336 = sst [smem:[#allocation33_spill]] %s2318_s11 }
   0xa   :  { %16 = vsyncpa [#allocation3], 0 }
   0xb   :  { %18 = vsyncpa [#allocation3 + $0x1], 0 }
   0xc   :  { %19 = vsyncpa [#allocation6], 0 }
   0xd   :  { %21 = vsyncpa [#allocation6 + $0x1], 0 }
   0xe   :  { %22 = vsyncpa [#allocation9], 0 }
   0xf   :  { %23 = vsyncpa [#allocation12], 0 }
  0x10   :  { %24 = vsyncpa [#allocation15], 0 }
  0x11   :  { %25 = vsyncpa [#allocation4], 0 }
  0x12   :  { %27 = vsyncpa [#allocation4 + $0x1], 0  ;;  %s1870_s17 = smov 0   ;;  %s1872_s18 = smov 0  }
  0x13   :  { %s1874_s19 = smov 0   ;;  %s1876_s20 = smov 0  }
  0x14   :  { %s1878_s21 = smov 0   ;;  %s1880_s22 = smov 0  }
  0x15 LB: > { %2337 = sst [smem:[#allocation24_spill]] %s1784_s20  ;;  %s1901_s23 = sadd.s32 4294967295, %s1792_s22   ;;  %s1792_s22 = sphi %s1880_s22, %s33_s22   ;;  %s1788_s21 = sphi %s1878_s21, %s2377_s21   ;;  %s1784_s20 = sphi %s1876_s20, %s2376_s20   ;;  %s1780_s19 = sphi %s1874_s19, %s2375_s19   ;;  %s1776_s18 = sphi %s1872_s18, %s2374_s18   ;;  %s1772_s17 = sphi %s1870_s17, %s2373_s17  }
  0x16   : > { %p1181_p0 = scmp.ge.s32.totalorder %s1792_s22, 1  ;;  %p2322_p1 = scmp.eq.s32.totalorder %s1901_s23, 0 }
  0x17   : > { %p330_p2 = scmp.lt.s32.totalorder %s1792_s22, 3  ;;  %s1794_s25 = smov [#allocation7]  }
  0x18   : > { %s342_s26 = sshll.u32 %s1794_s25, 4  ;;  %s1795_s28 = smov [#allocation8]   ;;  %s1910_s26 = int_to_ptr.vmem [resolvable:$true] %s342_s26 }
  0x19   : > { %p1906_p3 = pnand %p1181_p0, %p330_p2  ;;  %s355_s29 = sshll.u32 %s1795_s28, 4  ;;  %s1921_s29 = int_to_ptr.vmem [resolvable:$true] %s355_s29 }
  0x1a   : > { %s1796_s30 = smov [#allocation11]   ;;  %s2340_s3 = sld [smem:[#allocation27_spill]] }
  0x1b   : > { %s2338_s24 = scalar_select %p1906_p3, 1, 0 }
  0x1c   : > { %p1337_p4 = pneg %p1906_p3  ;;  %s1923_s12 = sshll.u32 %s1796_s30, 4  ;;  %s381_s12 = int_to_ptr.vmem [resolvable:$true] %s1923_s12 }
  0x1e   : > { %p1917_p6 = pnand %p1337_p4, %p2322_p1 }
  0x20   : > { %s1462_s15 = scalar_lea.hbm %s2340_s3, 512  ;;  %p1933_p8 = pneg %p1917_p6 }
  0x21   : > { %p1463_p7 = scmp.ne.s32.totalorder %s2340_s3, %s1462_s15  ;;  %p1469_p11 = scmp.lt.u32.totalorder %s1462_s15, %s2340_s3 }
  0x23   : > { %p1465_p9 = pnand %p1933_p8, %p1463_p7 }
  0x25   : > { %p1466_p10 = pneg %p1465_p9 }
  0x27   : > { %p1471_p12 = pnand %p1469_p11, %p1466_p10 }
  0x29   : > { %1474 = shalt.err (!%p1471_p12)
}
  0x2a   : > { %s1475_s13 = scalar_lea.vmem %s1910_s26, 512  ;;  %p1483_p4 = scmp.lt.s32.totalorder %s1910_s26, %s1910_s26 }
  0x2b   : > { %p1476_p13 = scmp.ne.s32.totalorder %s1910_s26, %s1475_s13  ;;  %p1484_p5 = scmp.lt.s32.totalorder %s1475_s13, %s1475_s13 }
  0x2d   : > { %p1478_p0 = pnand %p1476_p13, %p1933_p8  ;;  %p1485_p7 = por %p1484_p5, %p1483_p4 }
  0x2f   : > { %p1479_p2 = pneg %p1478_p0 }
  0x31   : > { %p1486_p9 = pnand %p1485_p7, %p1479_p2 }
  0x33   : > { %1489 = shalt.err (!%p1486_p9)
}
  0x34   : > { %s2324_s14 = smov 128   ;;  %s2325_s15 = smov 8  }
  0x35   : > { %1340 = dma.hbm_to_vmem [thread:$0]  (!%p1917_p6), %s2340_s3, 512, %s1910_s26, [#allocation6], %s2324_s14, %s2324_s14, %s2325_s15  }
  0x36   : > { %s2342_s4 = sld [smem:[#allocation28_spill]] }
  0x3c   : > { %s1490_s13 = scalar_lea.hbm %s2342_s4, 512 }
  0x3d   : > { %p1491_p5 = scmp.ne.s32.totalorder %s2342_s4, %s1490_s13  ;;  %p1497_p12 = scmp.lt.u32.totalorder %s1490_s13, %s2342_s4 }
  0x3f   : > { %p1493_p10 = pnand %p1491_p5, %p1933_p8 }
  0x41   : > { %p1494_p11 = pneg %p1493_p10 }
  0x43   : > { %p1499_p13 = pnand %p1497_p12, %p1494_p11 }
  0x45   : > { %1502 = shalt.err (!%p1499_p13)
}
  0x46   : > { %s1503_s26 = scalar_lea.vmem %s1921_s29, 512  ;;  %p1511_p7 = scmp.lt.s32.totalorder %s1921_s29, %s1921_s29 }
  0x47   : > { %p1504_p0 = scmp.ne.s32.totalorder %s1921_s29, %s1503_s26  ;;  %p1512_p9 = scmp.lt.s32.totalorder %s1503_s26, %s1503_s26 }
  0x49   : > { %p1506_p2 = pnand %p1504_p0, %p1933_p8  ;;  %p1513_p5 = por %p1512_p9, %p1511_p7 }
  0x4b   : > { %p1507_p4 = pneg %p1506_p2 }
  0x4d   : > { %p1514_p10 = pnand %p1513_p5, %p1507_p4 }
  0x4f   : > { %1517 = shalt.err (!%p1514_p10)
}
  0x50   : > { %1343 = dma.hbm_to_vmem [thread:$0]  (!%p1917_p6), %s2342_s4, 512, %s1921_s29, [#allocation9], %s2324_s14, %s2324_s14, %s2325_s15  }
  0x51   : > { %s2343_s6 = sld [smem:[#allocation30_spill]] }
  0x57   : > { %s1518_s16 = scalar_lea.hbm %s2343_s6, 16 }
  0x58   : > { %p1519_p11 = scmp.ne.s32.totalorder %s2343_s6, %s1518_s16  ;;  %p1525_p0 = scmp.lt.u32.totalorder %s1518_s16, %s2343_s6 }
  0x5a   : > { %p1521_p12 = pnand %p1519_p11, %p1933_p8 }
  0x5c   : > { %p1522_p13 = pneg %p1521_p12 }
  0x5e   : > { %p1527_p2 = pnand %p1525_p0, %p1522_p13 }
  0x60   : > { %1530 = shalt.err (!%p1527_p2)
}
  0x61   : > { %s1531_s26 = scalar_lea.vmem %s381_s12, 16  ;;  %s1538_s29 = scalar_lea.vmem %s381_s12, 32 }
  0x62   : > { %p1532_p4 = scmp.ne.s32.totalorder %s381_s12, %s1531_s26  ;;  %p1539_p5 = scmp.lt.s32.totalorder %s381_s12, %s381_s12 }
  0x63   : > { %p1540_p10 = scmp.lt.s32.totalorder %s1538_s29, %s1531_s26 }
  0x64   : > { %p1534_p7 = pnand %p1532_p4, %p1933_p8 }
  0x65   : > { %p1541_p1 = por %p1540_p10, %p1539_p5 }
  0x66   : > { %p1535_p9 = pneg %p1534_p7 }
  0x68   : > { %p1542_p3 = pnand %p1541_p1, %p1535_p9 }
  0x6a   : > { %1545 = shalt.err (!%p1542_p3)
}
  0x6b   : > { %1349 = dma.hbm_to_vmem [thread:$0]  (!%p1917_p6), %s2343_s6, 16, %s381_s12, [#allocation12]  }
  0x6c   : > { %s1799_s10 = smov [#allocation10]   ;;  %s1800_s16 = smov [#allocation13]  }
  0x6d   : > { %s369_s20 = sshll.u32 %s1799_s10, 4  ;;  %s391_s25 = sshll.u32 %s1800_s16, 4  ;;  %s370_s20 = int_to_ptr.vmem [resolvable:$true] %s369_s20  ;;  %s392_s25 = int_to_ptr.vmem [resolvable:$true] %s391_s25 }
  0x6e   : > { %s2344_s5 = sld [smem:[#allocation29_spill]] }
  0x74   : > { %s1546_s13 = scalar_lea.hbm %s2344_s5, 16 }
  0x75   : > { %p1547_p1 = scmp.ne.s32.totalorder %s2344_s5, %s1546_s13  ;;  %p1553_p12 = scmp.lt.u32.totalorder %s1546_s13, %s2344_s5 }
  0x77   : > { %p1549_p3 = pnand %p1547_p1, %p1933_p8 }
  0x79   : > { %p1550_p11 = pneg %p1549_p3 }
  0x7b   : > { %p1555_p13 = pnand %p1553_p12, %p1550_p11 }
  0x7d   : > { %1558 = shalt.err (!%p1555_p13)
}
  0x7e   : > { %s1559_s12 = scalar_lea.vmem %s370_s20, 16  ;;  %s1566_s9 = scalar_lea.vmem %s370_s20, 32 }
  0x7f   : > { %p1560_p0 = scmp.ne.s32.totalorder %s370_s20, %s1559_s12  ;;  %p1567_p7 = scmp.lt.s32.totalorder %s370_s20, %s370_s20 }
  0x80   : > { %p1568_p9 = scmp.lt.s32.totalorder %s1566_s9, %s1559_s12 }
  0x81   : > { %p1562_p2 = pnand %p1560_p0, %p1933_p8 }
  0x82   : > { %p1569_p5 = por %p1568_p9, %p1567_p7 }
  0x83   : > { %p1563_p4 = pneg %p1562_p2 }
  0x85   : > { %p1570_p10 = pnand %p1569_p5, %p1563_p4 }
  0x87   : > { %1573 = shalt.err (!%p1570_p10)
}
  0x88   : > { %1346 = dma.hbm_to_vmem [thread:$0]  (!%p1917_p6), %s2344_s5, 16, %s370_s20, [#allocation9]  }
  0x89   : > { %s1574_s30 = scalar_lea.hbm %s2314_s7, 64 }
  0x8a   : > { %p1575_p1 = scmp.ne.s32.totalorder %s2314_s7, %s1574_s30  ;;  %p1581_p12 = scmp.lt.u32.totalorder %s1574_s30, %s2314_s7 }
  0x8c   : > { %p1577_p3 = pnand %p1575_p1, %p1933_p8 }
  0x8e   : > { %p1578_p11 = pneg %p1577_p3 }
  0x90   : > { %p1583_p13 = pnand %p1581_p12, %p1578_p11 }
  0x92   : > { %1586 = shalt.err (!%p1583_p13)
}
  0x93   : > { %s1587_s12 = scalar_lea.vmem %s392_s25, 64  ;;  %p1595_p7 = scmp.lt.s32.totalorder %s392_s25, %s392_s25 }
  0x94   : > { %p1588_p0 = scmp.ne.s32.totalorder %s392_s25, %s1587_s12  ;;  %p1596_p9 = scmp.lt.s32.totalorder %s1587_s12, %s1587_s12 }
  0x96   : > { %p1590_p2 = pnand %p1588_p0, %p1933_p8  ;;  %p1597_p5 = por %p1596_p9, %p1595_p7 }
  0x98   : > { %p1591_p4 = pneg %p1590_p2 }
  0x9a   : > { %p1598_p10 = pnand %p1597_p5, %p1591_p4 }
  0x9c   : > { %1601 = shalt.err (!%p1598_p10)
}
  0x9d   : > { %1352 = dma.hbm_to_vmem [thread:$0]  (!%p1917_p6), %s2314_s7, 64, %s392_s25, [#allocation12]  }
  0x9e   : > { %s1801_s10 = smov [#allocation14]   ;;  %s1602_s30 = scalar_lea.hbm %s2315_s8, 16 }
  0x9f   : > { %s402_s16 = sshll.u32 %s1801_s10, 4  ;;  %p1603_p1 = scmp.ne.s32.totalorder %s2315_s8, %s1602_s30  ;;  %s403_s16 = int_to_ptr.vmem [resolvable:$true] %s402_s16 }
  0xa0   : > { %p1609_p12 = scmp.lt.u32.totalorder %s1602_s30, %s2315_s8 }
  0xa1   : > { %p1605_p3 = pnand %p1603_p1, %p1933_p8 }
  0xa3   : > { %p1606_p11 = pneg %p1605_p3 }
  0xa5   : > { %p1611_p13 = pnand %p1609_p12, %p1606_p11 }
  0xa7   : > { %1614 = shalt.err (!%p1611_p13)
}
  0xa8   : > { %s1615_s25 = scalar_lea.vmem %s403_s16, 16  ;;  %s1622_s12 = scalar_lea.vmem %s403_s16, 32 }
  0xa9   : > { %p1616_p0 = scmp.ne.s32.totalorder %s403_s16, %s1615_s25  ;;  %p1623_p7 = scmp.lt.s32.totalorder %s403_s16, %s403_s16 }
  0xaa   : > { %p1624_p9 = scmp.lt.s32.totalorder %s1622_s12, %s1615_s25 }
  0xab   : > { %p1618_p2 = pnand %p1616_p0, %p1933_p8 }
  0xac   : > { %p1625_p5 = por %p1624_p9, %p1623_p7 }
  0xad   : > { %p1619_p4 = pneg %p1618_p2 }
  0xaf   : > { %p1626_p10 = pnand %p1625_p5, %p1619_p4 }
  0xb1   : > { %1629 = shalt.err (!%p1626_p10)
}
  0xb2   : > { %1355 = dma.hbm_to_vmem [thread:$0]  (!%p1917_p6), %s2315_s8, 16, %s403_s16, [#allocation15]  }
  0xb3   : > { %s1180_s11 = sadd.s32 4294967294, %s1792_s22   ;;  %s45_s10 = sadd.s32 1, %s1788_s21 }
  0xb4   : > { %p47_p8 = scmp.ge.s32.totalorder %s45_s10, 2  ;;  %s54_s27 = sadd.s32 1, %s1780_s19 }
  0xb5   : > { %p61_p1 = scmp.ne.s32.totalorder %s1780_s19, %s1776_s18  ;;  %p62_p3 = scmp.eq.s32.totalorder %s1792_s22, 0 }
  0xb6   : > { %s2379_s10 = smov (%p47_p8, %s45_s10), 0  ;;  %p67_p12 = scmp.ne.s32.totalorder %s1776_s18, %s1772_s17 }
  0xb7   : > { %p2064_p11 = por %p62_p3, %p61_p1  ;;  %s49_s16 = ssub.s32 %s1788_s21, %s2379_s10 }
  0xb8   : > { %p317_p6 = scmp.eq.s32.totalorder %s1901_s23, 1  ;;  %p52_p13 = scmp.eq.s32.totalorder %s49_s16, 0 }
  0xb9   : > { %p2346_p0 = scmp.eq.s32.totalorder %s1901_s23, 0  ;;  %p323_p7 = scmp.eq.s32.totalorder %s1180_s11, 1 }
  0xba   : > { %p2079_p4 = por %p317_p6, %p61_p1  ;;  %p1373_p5 = scmp.lt.s32.totalorder %s1792_s22, 2 }
  0xbb   : > { %p2075_p2 = por %p2346_p0, %p67_p12  ;;  %p2086_p9 = por %p323_p7, %p67_p12 }
  0xbc   : > { %s2348_s30 = scalar_select %p2079_p4, 1, 0 }
  0xbd   : > { %s2347_s28 = scalar_select %p2075_p2, 1, 0 }
  0xbe   : > { %s2084_s13 = scalar_select %p52_p13, %s1780_s19, %s54_s27  }
  0xbf   : > { %s2349_s26 = scalar_select %p2086_p9, 1, 0 }
  0xc0   : > { %s2092_s29 = sand.u32 1, %s1780_s19   ;;  %s1220_s1 = sshll.u32 %s1788_s21, 8 }
  0xc1   : > { %s1189_s25 = sshll.u32 %s2092_s29, 4  ;;  %s2350_s0 = sld [smem:[#allocation25_spill]] }
  0xc2   : > { %s423_s11 = scalar_lea.vmem [#allocation2], %s1189_s25  ;;  %p2103_p10 = pnand %p1373_p5, %p2064_p11 }
  0xc3   : > { %s432_s27 = sshll.u32 %s423_s11, 4  ;;  %s420_s3 = scalar_lea.sflag [#allocation3], %s2092_s29  ;;  %s2107_s27 = int_to_ptr.vmem [resolvable:$true] %s432_s27 }
  0xc4   : > { %p1632_p1 = pneg %p2103_p10 }
  0xc7   : > { %s2099_s9 = scalar_lea.hbm %s2350_s0, %s1220_s1  ;;  %s1635_s25 = scalar_lea.hbm %s2350_s0, 512 }
  0xc8   : > { %s1630_s12 = scalar_lea.hbm %s2099_s9, 256  ;;  %p1636_p11 = scmp.lt.u32.totalorder %s2099_s9, %s2350_s0 }
  0xc9   : > { %p1631_p8 = scmp.ne.s32.totalorder %s2099_s9, %s1630_s12  ;;  %p1637_p6 = scmp.lt.u32.totalorder %s1635_s25, %s1630_s12 }
  0xca   : > { %p1639_p0 = scmp.lt.u32.totalorder %s1630_s12, %s2099_s9 }
  0xcb   : > { %p1633_p3 = pnand %p1632_p1, %p1631_p8  ;;  %p1638_p13 = por %p1637_p6, %p1636_p11 }
  0xcd   : > { %p1634_p12 = pneg %p1633_p3  ;;  %p1640_p7 = por %p1639_p0, %p1638_p13 }
  0xcf   : > { %p1641_p5 = pnand %p1640_p7, %p1634_p12 }
  0xd1   : > { %1644 = shalt.err (!%p1641_p5)
}
  0xd2   : > { %s1645_s15 = scalar_lea.vmem %s2107_s27, 256  ;;  %s1802_s1 = smov [#allocation2]  }
  0xd3   : > { %p1646_p8 = scmp.ne.s32.totalorder %s2107_s27, %s1645_s15  ;;  %s1650_s14 = sshll.u32 %s1802_s1, 4  ;;  %s1651_s14 = int_to_ptr.vmem [resolvable:$false] %s1650_s14 }
  0xd4   : > { %s1652_s20 = scalar_lea.vmem %s1651_s14, 512  ;;  %p1653_p4 = scmp.lt.s32.totalorder %s2107_s27, %s1651_s14 }
  0xd5   : > { %p1648_p3 = pnand %p1646_p8, %p1632_p1  ;;  %p1654_p11 = scmp.lt.s32.totalorder %s1652_s20, %s1645_s15 }
  0xd7   : > { %p1649_p9 = pneg %p1648_p3  ;;  %p1655_p6 = por %p1654_p11, %p1653_p4 }
  0xd9   : > { %p1656_p13 = pnand %p1655_p6, %p1649_p9 }
  0xdb   : > { %1659 = shalt.err (!%p1656_p13)
}
  0xdc   : > { %s2352_s12 = smov 8   ;;  %s2353_s25 = smov 128  }
  0xdd   : > { %1359 = dma.hbm_to_vmem [thread:$0]  (!%p2103_p10), %s2099_s9, 256, %s2107_s27, %s420_s3, %s2353_s25, %s2353_s25, %s2352_s12  }
  0xde   : > { %s1192_s11 = sshll.u32 %s1788_s21, 4  ;;  %s454_s20 = scalar_lea.vmem [#allocation5], %s2092_s29 }
  0xdf   : > { %s2145_s14 = scalar_lea.hbm %s2309_s2, %s1192_s11  ;;  %s462_s0 = sshll.u32 %s454_s20, 4  ;;  %s463_s0 = int_to_ptr.vmem [resolvable:$true] %s462_s0 }
  0xe0   : > { %s2354_s4 = sand.u32 1, %s1792_s22   ;;  %s1660_s6 = scalar_lea.hbm %s2145_s14, 16 }
  0xe1   : > { %s452_s5 = scalar_lea.sflag [#allocation6], %s2354_s4  ;;  %p1661_p4 = scmp.ne.s32.totalorder %s2145_s14, %s1660_s6 }
  0xe2   : > { %s1665_s27 = scalar_lea.hbm %s2309_s2, 32  ;;  %p1666_p0 = scmp.lt.u32.totalorder %s2145_s14, %s2309_s2 }
  0xe3   : > { %p1663_p9 = pnand %p1661_p4, %p1632_p1  ;;  %p1667_p7 = scmp.lt.u32.totalorder %s1665_s27, %s1660_s6 }
  0xe4   : > { %p1669_p8 = scmp.lt.u32.totalorder %s1660_s6, %s2145_s14 }
  0xe5   : > { %p1664_p12 = pneg %p1663_p9  ;;  %p1668_p5 = por %p1667_p7, %p1666_p0 }
  0xe7   : > { %p1670_p3 = por %p1669_p8, %p1668_p5 }
  0xe9   : > { %p1671_p11 = pnand %p1670_p3, %p1664_p12 }
  0xeb   : > { %1674 = shalt.err (!%p1671_p11)
}
  0xec   : > { %s1675_s4 = scalar_lea.vmem %s463_s0, 16  ;;  %s1803_s29 = smov [#allocation5]  }
  0xed   : > { %p1676_p6 = scmp.ne.s32.totalorder %s463_s0, %s1675_s4  ;;  %s1680_s11 = sshll.u32 %s1803_s29, 4  ;;  %s1681_s11 = int_to_ptr.vmem [resolvable:$false] %s1680_s11 }
  0xee   : > { %s1682_s1 = scalar_lea.vmem %s1681_s11, 32  ;;  %p1683_p9 = scmp.lt.s32.totalorder %s463_s0, %s1681_s11 }
  0xef   : > { %p1678_p13 = pnand %p1676_p6, %p1632_p1  ;;  %p1684_p2 = scmp.lt.s32.totalorder %s1682_s1, %s1675_s4 }
  0xf1   : > { %p1679_p4 = pneg %p1678_p13  ;;  %p1685_p0 = por %p1684_p2, %p1683_p9 }
  0xf3   : > { %p1686_p7 = pnand %p1685_p0, %p1679_p4 }
  0xf5   : > { %1689 = shalt.err (!%p1686_p7)
}
  0xf6   : > { %1362 = dma.hbm_to_vmem [thread:$0]  (!%p2103_p10), %s2145_s14, 16, %s463_s0, %s452_s5  }
  0xf7   : > { %p2355_p12 = scmp.ne.s32.totalorder %s2338_s24, 0 }
  0xf8   : > { %s2172_s6 = sand.u32 (!%p2355_p12), 1, %s1776_s18   ;;  %p2356_p2 = scmp.ne.s32.totalorder (!%p2355_p12), %s2347_s28, 0 }
  0xf9   : > { %471 = sbr.rel (%p2355_p12) target bundleno = 808 (0x328), region = 64  ;;  %s1194_s15 = sshll.u32 (!%p2355_p12), %s2172_s6, 4 }
  0xfa   : > { %s474_s20 = scalar_lea.sflag (!%p2355_p12), [#allocation3], %s2172_s6  ;;  %s2178_s3 = scalar_lea.vmem (!%p2355_p12), [#allocation2], %s1194_s15 }
 0x100   : > { %1743 = dma.done.wait (%p2356_p2), %s474_s20, 256  }
 0x101   : > { %1745 = vsyncadd (%p2356_p2), %s474_s20, 4294967040  ;;  %s482_s0 = sand.u32 1, %s1901_s23   ;;  %s485_s24 = scalar_lea.vmem [#allocation5], %s2172_s6 }
 0x102   : > { %s483_s5 = scalar_lea.sflag [#allocation6], %s482_s0 }
 0x103   : > { %1747 = dma.done.wait (%p2356_p2), %s483_s5, 16  }
 0x104   : > { %1749 = vsyncadd (%p2356_p2), %s483_s5, 4294967280  ;;  %p2357_p10 = scmp.eq.s32.totalorder %s1901_s23, 0 }
 0x106   : > { %1751 = dma.done.wait (%p2357_p10), [#allocation6], 512   ;;  %p2358_p1 = pmov %p2357_p10 }
 0x108   : > { %1753 = vsyncadd (%p2358_p1), [#allocation6], 4294966784  ;;  %p2359_p5 = pmov %p2358_p1 }
 0x109   : > { %p2360_p8 = pmov %p2358_p1 }
 0x10a   : > { %1755 = dma.done.wait (%p2359_p5), [#allocation9], 528  }
 0x10b   : > { %1757 = vsyncadd (%p2360_p8), [#allocation9], 4294966768  ;;  %p2361_p3 = pmov %p2358_p1 }
 0x10c   : > { %p2362_p11 = pmov %p2358_p1 }
 0x10d   : > { %1759 = dma.done.wait (%p2361_p3), [#allocation12], 80  }
 0x10e   : > { %1761 = vsyncadd (%p2362_p11), [#allocation12], 4294967216  ;;  %p2363_p6 = pmov %p2358_p1 }
 0x10f   : > { %p2364_p13 = pmov %p2358_p1 }
 0x110   : > { %1763 = dma.done.wait (%p2363_p6), [#allocation15], 16  }
 0x111   : > { %1765 = vsyncadd (%p2364_p13), [#allocation15], 4294967280  ;;  %s2365_s28 = sld [smem:[#allocation24_spill]]  ;;  %v1804_v0 = vmov 0.0|0.0   ;;  %vm1805_vm0 = vmmov 0   ;;  %v1806_v1 = vmov 0.0   ;;  %v800_v54 = vlaneseq }
 0x112   : > { %1293 = vmatprep.subr.bf16.mxu1 %v1804_v0  ;;  %1267 = vmatprep.mubr.msk.f32.mxu1 %vm1805_vm0, %v1806_v1  ;;  %v688_v2 = vld [vmem:[#allocation8] sm:$0xff]  ;;  %v689_v3 = vld [vmem:[#allocation8 + $0x8] sm:$0xff]  ;;  %v690_v4 = vld [vmem:[#allocation8 + $0x10] sm:$0xff]  ;;  %s2366_s9 = sld [smem:[#allocation26_spill]]  ;;  %vm572_vm1 = vcmask 1040384   ;;  %vm599_vm2 = vcmask 261120  }
 0x113   : > { %1287 = vmatprep.subr.bf16.mxu0 %v1804_v0  ;;  %1250 = vmatprep.mubr.msk.f32.mxu0 %vm1805_vm0, %v1806_v1  ;;  %v1294_v5 = vpack.c.bf16 %v689_v3, %v688_v2  ;;  %v691_v6 = vld [vmem:[#allocation8 + $0x18] sm:$0xff]  ;;  %v588_v8 = vld [vmem:[#allocation7] sm:$0xff]  ;;  %v589_v11 = vld [vmem:[#allocation7 + $0x8] sm:$0xff]  ;;  %vm586_vm3 = vcmask 1041408   ;;  %s2367_s4 = sld [smem:[#allocation31_spill]]  ;;  %v801_v57 = vshrl.u32 %v800_v54, 7 }
 0x114   : > { %v567_v7 = vld [vmem:[%s2178_s3] sm:$0xff]  ;;  %v1297_v9 = vpack.c.bf16 %v691_v6, %v690_v4  ;;  %v568_v15 = vld [vmem:[%s2178_s3 + $0x8] sm:$0xff]  ;;  %v1288_v16 = vpack.c.bf16 %v589_v11, %v588_v8  ;;  %vm848_vm5 = vcmask 1046528   ;;  %vm868_vm7 = vcmask 1045504   ;;  %s557_s5 = scalar_lea.vmem [#allocation16], %s1194_s15  ;;  %s2368_s14 = sld [smem:[#allocation32_spill]] }
 0x115   : > { %1295 = vmatpush3.bf16.msra.mxu1 %v1294_v5  ;;  %v573_v10 = vrot.slane %v567_v7, 7  ;;  %v590_v12 = vld [vmem:[#allocation7 + $0x10] sm:$0xff]  ;;  %v591_v13 = vld [vmem:[#allocation7 + $0x18] sm:$0xff]  ;;  %v574_v19 = vrot.slane %v568_v15, 7  ;;  %v1207_v30 = vld [vmem:[#allocation11] ss:$0 sm:$0xff] }
 0x116   : > { %1296 = vmatprep.subr.bf16.mxu1 %v1804_v0  ;;  %1289 = vmatpush3.bf16.msra.mxu0 %v1288_v16  ;;  %v1291_v17 = vpack.c.bf16 %v591_v13, %v590_v12  ;;  %v1202_v20 = vld [vmem:[%s485_s24] ss:$0 sm:$0xff]  ;;  %v1203_v58 = vld [vmem:[#allocation10] ss:$0 sm:$0xff]  ;;  %v807_v61 = vadd.s32 4294967295, %v801_v57  ;;  %v840_v62 = vsub.s32 1, %v801_v57 }
 0x117   : > { %p559_p4 = scmp.lt.s32.totalorder %s2365_s28, 1  ;;  %1290 = vmatprep.subr.bf16.mxu0 %v1804_v0  ;;  %v575_v21 = vsel %vm572_vm1, %v573_v10, %v574_v19  ;;  %v585_v22 = vsel %vm572_vm1, %v574_v19, %v1202_v20  ;;  %v822_v0 = vld [vmem:[#allocation13] sm:$0x7]  ;;  %v825_v2 = vsub.s32 0, %v801_v57  ;;  %v803_v5 = vadd.s32 16, %v801_v57  ;;  %s1002_s24 = sshll.u32 %s557_s5, 4  ;;  %s2251_s24 = int_to_ptr.vmem [resolvable:$true] %s1002_s24 }
 0x118   : > { %v587_v23 = vsel %vm586_vm3, %v585_v22, 0.0  ;;  %vm810_vm4 = vcmp.ge.s32.totalorder %v807_v61, 0  ;;  %v841_v4 = vrot.slane %v822_v0, %v840_v62  ;;  %s2369_s25 = sld [smem:[#allocation33_spill]]  ;;  %s987_s15 = scalar_lea.sflag [#allocation4], %s2172_s6 }
 0x119   : > { %s560_s16 = scalar_select %p559_p4, %s2365_s28, 1  ;;  %1298 = vmatpush3.bf16.msra.mxu1 %v1297_v9  ;;  %v892_v24 = vld [vmem:[%s2367_s4] sm:$0xff]  ;;  %v893_v25 = vld [vmem:[%s2367_s4 + $0x8] sm:$0xff]  ;;  %v894_v27 = vld [vmem:[%s2367_s4 + $0x10] sm:$0xff]  ;;  %v826_v9 = vrot.slane %v822_v0, %v825_v2  ;;  %v809_v13 = vadd.s32 4294967295, %v803_v5 }
 0x11a   : > { %1292 = vmatpush3.bf16.msra.mxu0 %v1291_v17  ;;  %v1299_v26 = vpack.c.bf16 %v893_v25, %v892_v24  ;;  %v895_v28 = vld [vmem:[%s2367_s4 + $0x18] sm:$0xff]  ;;  %p2370_p0 = scmp.ne.s32.totalorder %s2348_s30, 0  ;;  %s1807_s11 = smov [#allocation16]  }
 0x11b   : > { %s564_s27 = scalar_lea.vmem %s2366_s9, %s560_s16  ;;  %v1303_v29 = vpack.c.bf16 %v895_v28, %v894_v27  ;;  %vm815_vm6 = vcmp.lt.s32.totalorder %v809_v13, 16  ;;  %s1221_s9 = sshll.u32 %s2365_s28, 8 }
 0x11c   : > { %v566_v14 = vld [vmem:[%s564_s27] sm:$0x1]  ;;  %1300 = vmatprep.subr.bf16.mxu0 %v1299_v26  ;;  %s1690_s28 = scalar_lea.vmem %s2251_s24, 256  ;;  %s1694_s1 = sshll.u32 %s1807_s11, 4  ;;  %s1695_s1 = int_to_ptr.vmem [resolvable:$false] %s1694_s1 }
 0x11d   : > { %v584_v18 = vsel %vm572_vm1, %v566_v14, %v573_v10  ;;  %p1691_p9 = scmp.ne.s32.totalorder %s2251_s24, %s1690_s28  ;;  %s1696_s20 = scalar_lea.vmem %s1695_s1, 512 }
 0x11e   : > { %1268 = vmatmul.mubr.msk.f32.vlgmr.msra.gmra.mrb[0].mxu1 %vm599_vm2, %v584_v18  ;;  %1251 = vmatmul.mubr.msk.f32.vlgmr.msra.gmra.mrb[0].mxu0 %vm599_vm2, %v584_v18  ;;  %v1211_v18 = vld [vmem:[#allocation14] ss:$0 sm:$0xff]  ;;  %s2256_s29 = scalar_lea.hbm %s2369_s25, %s1221_s9  ;;  %p1697_p2 = scmp.lt.s32.totalorder %s2251_s24, %s1695_s1 }
 0x11f   : > { %1270 = vmatprep.mubr.msk.f32.mxu1 %vm1805_vm0, %v1806_v1  ;;  %1253 = vmatprep.mubr.msk.f32.mxu0 %vm1805_vm0, %v1806_v1  ;;  %p1692_p7 = pnand %p1691_p9, %p2370_p0  ;;  %p1698_p10 = scmp.lt.s32.totalorder %s1696_s20, %s1690_s28 }
 0x120   : > { %1302 = vmatpush3.bf16.msra.mxu0 %v1299_v26 }
 0x121   : > { %1304 = vmatprep.subr.bf16.mxu0 %v1303_v29  ;;  %p1693_p12 = pneg %p1692_p7  ;;  %p1699_p1 = por %p1698_p10, %p1697_p2 }
 0x122   : > { %1271 = vmatmul.mubr.msk.f32.gmra.mrb[2].mxu1 %vm599_vm2, %v575_v21  ;;  %1254 = vmatmul.mubr.msk.f32.gmra.mrb[2].mxu0 %vm599_vm2, %v575_v21 }
 0x123   : > { %1273 = vmatprep.mubr.msk.f32.mxu1 %vm1805_vm0, %v1806_v1  ;;  %1256 = vmatprep.mubr.msk.f32.mxu0 %vm1805_vm0, %v1806_v1  ;;  %v860_v1 = vsub.s32 2, %v801_v57  ;;  %p1700_p5 = pnand %p1699_p1, %p1693_p12 }
 0x124   : > { %1306 = vmatpush3.bf16.msra.mxu0 %v1303_v29 }
 0x125   : > { %v861_v7 = vrot.slane %v822_v0, %v860_v1 }
 0x126   : > { %1274 = vmatmul.mubr.msk.f32.gmra.mrb[4].mxu1 %vm599_vm2, %v587_v23  ;;  %1257 = vmatmul.mubr.msk.f32.gmra.mrb[4].mxu0 %vm599_vm2, %v587_v23 }
 0x1f1   : > { %v765_v31 = vpop.f32.mrb[0].mxu1  ;;  %v674_v35 = vpop.f32.mrb[0].mxu0 }
 0x1f2   : > { %v766_v32 = vadd.f32 %v1207_v30, %v765_v31  ;;  %v1269_v33 = vpop.f32.mrb[1].mxu1  ;;  %v1252_v37 = vpop.f32.mrb[1].mxu0  ;;  %v675_v63 = vadd.f32 %v1203_v58, %v674_v35 }
 0x1f4   : > { %v779_v34 = vsub.f32 0.0, %v766_v32 }
 0x1f5   : > { %v770_v36 = vpop.f32.mrb[2].mxu1  ;;  %v679_v42 = vpop.f32.mrb[2].mxu0 }
 0x1f6   : > { %v782_v38 = vmul.f32 1.442695, %v779_v34  ;;  %v771_v39 = vadd.f32 %v1207_v30, %v770_v36  ;;  %v1272_v40 = vpop.f32.mrb[3].mxu1  ;;  %v1255_v44 = vpop.f32.mrb[3].mxu0  ;;  %v680_v8 = vadd.f32 %v1203_v58, %v679_v42 }
 0x1f8   : > { %1442 = vpow2.f32 %v782_v38  ;;  %v780_v41 = vsub.f32 0.0, %v771_v39 }
 0x1f9   : > { %v775_v43 = vpop.f32.mrb[4].mxu1  ;;  %v684_v49 = vpop.f32.mrb[4].mxu0 }
 0x1fa   : > { %v784_v45 = vmul.f32 1.442695, %v780_v41  ;;  %v776_v46 = vadd.f32 %v1207_v30, %v775_v43  ;;  %v1275_v47 = vpop.f32.mrb[5].mxu1  ;;  %v1258_v50 = vpop.f32.mrb[5].mxu0  ;;  %v685_v16 = vadd.f32 %v1203_v58, %v684_v49 }
 0x1fc   : > { %1444 = vpow2.f32 %v784_v45  ;;  %v781_v48 = vsub.f32 0.0, %v776_v46 }
 0x1fe   : > { %v786_v51 = vmul.f32 1.442695, %v781_v48 }
 0x200   : > { %1446 = vpow2.f32 %v786_v51 }
 0x202   : > { %v1443_v52 = vpop.eup %1442 }
 0x203   : > { %v788_v53 = vadd.f32 1.0, %v1443_v52 }
 0x205   : > { %1448 = vrcp.f32 %v788_v53 }
 0x206   : > { %v1445_v55 = vpop.eup %1444 }
 0x207   : > { %v789_v56 = vadd.f32 1.0, %v1445_v55  ;;  %v1212_v55 = vld [vmem:[%s2368_s14] ss:$0 sm:$0xff] }
 0x209   : > { %1450 = vrcp.f32 %v789_v56 }
 0x20a   : > { %v1447_v59 = vpop.eup %1446 }
 0x20b   : > { %v790_v60 = vadd.f32 1.0, %v1447_v59 }
 0x20d   : > { %1452 = vrcp.f32 %v790_v60 }
 0x20f   : > { %v1449_v3 = vpop.eup %1448 }
 0x210   : > { %v797_v6 = vmul.f32 %v1449_v3, %v675_v63 }
 0x212   : > { %v819_v10 = vsel %vm810_vm4, %v797_v6, 0.0 }
 0x213   : > { %v1451_v11 = vpop.eup %1450  ;;  %v842_v12 = vmul.f32 %v841_v4, %v819_v10  ;;  %v862_v14 = vmul.f32 %v861_v7, %v819_v10  ;;  %v827_v17 = vmul.f32 %v826_v9, %v819_v10 }
 0x214   : > { %v798_v15 = vmul.f32 %v1451_v11, %v680_v8 }
 0x215   : > { %v849_v22 = vrot.slane %v842_v12, 1  ;;  %v869_v23 = vrot.slane %v862_v14, 2  ;;  %v836_v27 = vadd.f32 %v1211_v18, %v827_v17 }
 0x216   : > { %v843_v19 = vmul.f32 %v841_v4, %v798_v15  ;;  %v863_v20 = vmul.f32 %v861_v7, %v798_v15  ;;  %v828_v28 = vmul.f32 %v826_v9, %v798_v15 }
 0x217   : > { %v1453_v21 = vpop.eup %1452 }
 0x218   : > { %v850_v24 = vrot.slane %v843_v19, 1  ;;  %v870_v25 = vrot.slane %v863_v20, 2  ;;  %v799_v26 = vmul.f32 %v1453_v21, %v685_v16  ;;  %v837_v38 = vadd.f32 %v1211_v18, %v828_v28 }
 0x21a   : > { %v851_v29 = vsel %vm848_vm5, %v849_v22, %v850_v24  ;;  %v821_v30 = vsel %vm815_vm6, %v799_v26, 0.0  ;;  %v871_v31 = vsel %vm868_vm7, %v869_v23, %v870_v25 }
 0x21b   : > { %v844_v32 = vmul.f32 %v841_v4, %v821_v30  ;;  %v864_v33 = vmul.f32 %v861_v7, %v821_v30  ;;  %v856_v34 = vadd.f32 %v851_v29, %v836_v27 }
 0x21d   : > { %v852_v35 = vrot.slane %v844_v32, 1  ;;  %v872_v36 = vrot.slane %v864_v33, 2  ;;  %v876_v37 = vadd.f32 %v871_v31, %v856_v34 }
 0x21f   : > { %v853_v39 = vsel %vm848_vm5, %v850_v24, %v852_v35  ;;  %v873_v40 = vsel %vm868_vm7, %v870_v25, %v872_v36  ;;  %v878_v41 = vsub.f32 0.0, %v876_v37 }
 0x220   : > { %v857_v42 = vadd.f32 %v853_v39, %v837_v38 }
 0x221   : > { %v880_v43 = vmul.f32 1.442695, %v878_v41 }
 0x222   : > { %v877_v44 = vadd.f32 %v873_v40, %v857_v42 }
 0x223   : > { %1454 = vpow2.f32 %v880_v43 }
 0x224   : > { %v879_v45 = vsub.f32 0.0, %v877_v44 }
 0x226   : > { %v882_v46 = vmul.f32 1.442695, %v879_v45 }
 0x228   : > { %1456 = vpow2.f32 %v882_v46 }
 0x22d   : > { %v1455_v47 = vpop.eup %1454 }
 0x22e   : > { %v884_v48 = vadd.f32 1.0, %v1455_v47 }
 0x230   : > { %1458 = vrcp.f32 %v884_v48 }
 0x232   : > { %v1457_v49 = vpop.eup %1456 }
 0x233   : > { %v885_v50 = vadd.f32 1.0, %v1457_v49 }
 0x235   : > { %1460 = vrcp.f32 %v885_v50 }
 0x23a   : > { %v1459_v51 = vpop.eup %1458 }
 0x23b   : > { %v890_v52 = vmul.f32 %v1459_v51, %v876_v37 }
 0x23d   : > { %1284 = vmatprep.mubr.msk.f32.mxu0 %vm599_vm2, %v890_v52 }
 0x23f   : > { %v1461_v53 = vpop.eup %1460 }
 0x240   : > { %v891_v54 = vmul.f32 %v1461_v53, %v877_v44 }
 0x242   : > { %1285 = vmatmul.mubr.msk.f32.vlgmr.msra.gmra.mrb[6].mxu0 %vm599_vm2, %v891_v54 }
 0x315   : > { %v1286_v56 = vpop.f32.mrb[6].mxu0 }
 0x316   : > { %v981_v57 = vadd.f32 %v1286_v56, %v1212_v55  ;;  %v975_v58 = vpop.f32.mrb[7].mxu0 }
 0x317   : > { %v976_v59 = vadd.f32 %v1212_v55, %v975_v58 }
 0x318   : > { %985 = vst.msk [vmem:[%s557_s5 + $0x8] sm:$0xff] %vm599_vm2, %v981_v57 }
 0x319   : > { %984 = vst.msk [vmem:[%s557_s5] sm:$0xff] %vm599_vm2, %v976_v59 }
 0x31a   : > { %1703 = shalt.err (!%p1700_p5)
}
 0x31b   : > { %s1704_s3 = scalar_lea.hbm %s2256_s29, 256  ;;  %s1708_s16 = scalar_lea.hbm %s2369_s25, 512 }
 0x31c   : > { %p1705_p8 = scmp.ne.s32.totalorder %s2256_s29, %s1704_s3  ;;  %p1709_p6 = scmp.lt.u32.totalorder %s2256_s29, %s2369_s25 }
 0x31d   : > { %p1710_p13 = scmp.lt.u32.totalorder %s1708_s16, %s1704_s3  ;;  %p1712_p9 = scmp.lt.u32.totalorder %s1704_s3, %s2256_s29 }
 0x31e   : > { %p1706_p3 = pnand %p1705_p8, %p2370_p0 }
 0x31f   : > { %p1711_p4 = por %p1710_p13, %p1709_p6 }
 0x320   : > { %p1707_p11 = pneg %p1706_p3 }
 0x321   : > { %p1713_p7 = por %p1712_p9, %p1711_p4 }
 0x323   : > { %p1714_p12 = pnand %p1713_p7, %p1707_p11 }
 0x325   : > { %1717 = shalt.err (!%p1714_p12)
}
 0x326   : > { %s1808_s9 = smov 128   ;;  %s1809_s27 = smov 8  }
 0x327   : > { %1335 = dma.vmem_to_hbm [thread:$0]  (%p2370_p0), %s2251_s24, 256, %s2256_s29, %s987_s15, %s1808_s9, %s1808_s9, %s1809_s27  }
 0x328 PF: > { %s1017_s12 = sand.u32 1, %s1772_s17   ;;  %p2371_p2 = scmp.ne.s32.totalorder %s2349_s26, 0 }
 0x329   : > { %p2372_p10 = scmp.ge.s32.totalorder %s1792_s22, 2  ;;  %s1018_s28 = scalar_lea.sflag [#allocation4], %s1017_s12 }
 0x32b   : > { %p1364_p1 = pnand %p2372_p10, %p2371_p2 }
 0x32d   : > { %1767 = dma.done.wait (!%p1364_p1), %s1018_s28, 256  }
 0x32e   : > { %1769 = vsyncadd (!%p1364_p1), %s1018_s28, 4294967040  ;;  %s33_s22 = sadd.s32 1, %s1792_s22   ;;  %s2373_s17 = smov %s1776_s18 }
 0x32f   : > { %p30_p5 = scmp.ge.s32.totalorder %s33_s22, 4   ;;  %s2374_s18 = smov %s1780_s19 }
 0x330   : > { %s2375_s19 = smov %s2084_s13  ;;  %s2376_s20 = smov %s1788_s21 }
 0x331   : > { %s2377_s21 = smov %s2379_s10  ;;  %32 = sbr.rel (!%p30_p5) target bundleno = 21 (0x15), region = 149 }
 0x338   :  { %1023 = vsyncpa [#allocation3], 1 }
 0x339   :  { %1025 = vsyncpa [#allocation3 + $0x1], 1 }
 0x33a   :  { %1026 = vsyncpa [#allocation6], 1 }
 0x33b   :  { %1028 = vsyncpa [#allocation6 + $0x1], 1 }
 0x33c   :  { %1029 = vsyncpa [#allocation9], 1 }
 0x33d   :  { %1030 = vsyncpa [#allocation12], 1 }
 0x33e   :  { %1031 = vsyncpa [#allocation15], 1 }
 0x33f   :  { %1032 = vsyncpa [#allocation4], 1 }
 0x340   :  { %1034 = vsyncpa [#allocation4 + $0x1], 1 }

</bundles_post_ra>
